<compile_context>
chip_gen: v5e
topology: v5e:2x2
jax: 0.10.0
libtpu: 0.0.40
codegen_flags: <defaults>
</compile_context>

<pallas_src>
import jax
import jax.numpy as jnp
from jax.experimental import pallas as pl
from jax.experimental.pallas import tpu as pltpu


# ---------------------------------------------------------------------------
# helpers
# ---------------------------------------------------------------------------
def _round_up(x, m):
    return (x + m - 1) // m * m


def _tile(dim, preferred):
    for t in preferred:
        if dim % t == 0:
            return t
    return dim


# ---------------------------------------------------------------------------
# Kernel: fused Linear(F -> E) + eval-mode BatchNorm1d(E)
#   y = (x @ W^T + b) * scale + shift
#   scale = gamma / sqrt(running_var + eps),  shift = beta - running_mean * scale
# Grid = (B tiles, E tiles, K tiles); K is the reduction axis (innermost, "arbitrary"),
# accumulated in a f32 VMEM scratch; bias + BN affine applied on the last K step.
# ---------------------------------------------------------------------------
def _cnn_head_kernel(x_ref, w_ref, b_ref, scale_ref, shift_ref, o_ref, acc_ref):
    k = pl.program_id(2)

    @pl.when(k == 0)
    def _():
        acc_ref[...] = jnp.zeros_like(acc_ref)

    acc_ref[...] += jnp.dot(
        x_ref[...].astype(jnp.bfloat16),   # (tb, tk) bf16
        w_ref[...],                        # (tk, te) bf16 (pre-cast)
        preferred_element_type=jnp.float32)

    @pl.when(k == pl.num_programs(2) - 1)
    def _():
        y = acc_ref[...] + b_ref[...]
        o_ref[...] = (y * scale_ref[...] + shift_ref[...]).astype(o_ref.dtype)


def cnn_head(pooled_p, w_t, bias, scale, shift):
    """pooled_p: (Bp, F) f32; w_t: (F, Ep) bf16; bias/scale/shift: (1, Ep) f32."""
    bp, f = pooled_p.shape
    ep = w_t.shape[1]
    tb = _tile(bp, (256, 128, 64, 32, 16, 8))
    te = _tile(ep, (512, 256, 128))
    tk = _tile(f, (512, 256, 128))
    return pl.pallas_call(
        _cnn_head_kernel,
        out_shape=jax.ShapeDtypeStruct((bp, ep), jnp.float32),
        grid_spec=pltpu.PrefetchScalarGridSpec(
            num_scalar_prefetch=0,
            grid=(bp // tb, ep // te, f // tk),
            in_specs=[
                pl.BlockSpec((tb, tk), lambda i, j, k: (i, k)),   # x chunk
                pl.BlockSpec((tk, te), lambda i, j, k: (k, j)),   # W^T chunk (bf16)
                pl.BlockSpec((1, te), lambda i, j, k: (0, j)),    # fc bias
                pl.BlockSpec((1, te), lambda i, j, k: (0, j)),    # BN scale
                pl.BlockSpec((1, te), lambda i, j, k: (0, j)),    # BN shift
            ],
            out_specs=pl.BlockSpec((tb, te), lambda i, j, k: (i, j)),
            scratch_shapes=[pltpu.VMEM((tb, te), jnp.float32)],   # f32 accumulator
        ),
        compiler_params=pltpu.CompilerParams(
            dimension_semantics=("parallel", "parallel", "arbitrary")),
    )(pooled_p, w_t, bias, scale, shift)


# ---------------------------------------------------------------------------
# Full CNN.forward (from the pooled ResNet features onward)
# ---------------------------------------------------------------------------
def cnn_forward(pooled_feats, kp):
    b = pooled_feats.shape[0]
    e = kp["embed_size"]
    bp = _round_up(b, 8)                                    # full-sublane batch tiles
    pooled_p = jnp.pad(pooled_feats, ((0, bp - b), (0, 0)))
    out = cnn_head(pooled_p, kp["w_t"], kp["b"], kp["bn_scale"], kp["bn_shift"])
    return out[:b, :e]                                       # drop batch / embed padding


# ---------------------------------------------------------------------------
# Pure-JAX reference (same bf16-operand / f32-accumulate matmul numerics)
# ---------------------------------------------------------------------------
def forward_reference(pooled_feats, p):
    y = jnp.dot(pooled_feats.astype(jnp.bfloat16), p["fc_w"].T.astype(jnp.bfloat16),
                preferred_element_type=jnp.float32) + p["fc_b"]
    return ((y - p["bn_mean"]) / jnp.sqrt(p["bn_var"] + 1e-5)) * p["bn_gamma"] + p["bn_beta"]


# ---------------------------------------------------------------------------
# Parameter construction (PyTorch-equivalent init) + kernel-layout preparation
# ---------------------------------------------------------------------------
def init_params(key, embed_size, feat_size):
    e, f = embed_size, feat_size
    ks = jax.random.split(key, 6)
    s = 1.0 / (f ** 0.5)
    return {
        # nn.Linear(resnet.fc.in_features, embed_size): weight (out, in), U(-1/sqrt(in), +)
        "fc_w": jax.random.uniform(ks[0], (e, f), jnp.float32, -s, s),
        "fc_b": jax.random.uniform(ks[1], (e,), jnp.float32, -s, s),
        # nn.BatchNorm1d(embed_size): non-trivial affine/running stats for a meaningful test
        "bn_gamma": jax.random.uniform(ks[2], (e,), jnp.float32, 0.5, 1.5),
        "bn_beta": 0.1 * jax.random.normal(ks[3], (e,), jnp.float32),
        "bn_mean": 0.1 * jax.random.normal(ks[4], (e,), jnp.float32),
        "bn_var": jax.random.uniform(ks[5], (e,), jnp.float32, 0.5, 1.5),
    }


def prepare_kernel_params(p, embed_size):
    e = embed_size
    ep = _round_up(e, 128)                                   # lane-dense output columns
    scale = p["bn_gamma"] / jnp.sqrt(p["bn_var"] + 1e-5)
    shift = p["bn_beta"] - p["bn_mean"] * scale
    return {
        "embed_size": e,
        "w_t": jnp.pad(p["fc_w"].T, ((0, 0), (0, ep - e))).astype(jnp.bfloat16),  # (F, Ep)
        "b": jnp.pad(p["fc_b"], (0, ep - e))[None, :],                             # (1, Ep)
        "bn_scale": jnp.pad(scale, (0, ep - e))[None, :],
        "bn_shift": jnp.pad(shift, (0, ep - e))[None, :],
    }


if __name__ == "__main__":
    B, EMBED, FEAT = 2, 32, 2048                             # FEAT = resnet50 fc.in_features

    key = jax.random.PRNGKey(0)
    k_par, k_img = jax.random.split(key)

    params = init_params(k_par, EMBED, FEAT)
    kparams = prepare_kernel_params(params, EMBED)

    # TODO(synk): the frozen, pretrained ResNet-50 backbone (models.resnet50(pretrained=True))
    # has no clean in-script Pallas equivalent (pretrained weights cannot be loaded offline);
    # the kernel starts from its global-average-pooled (B, 2048) output, stood in here by
    # random features.
    pooled = jax.random.normal(k_img, (B, FEAT), jnp.float32)

    out = jax.block_until_ready(cnn_forward(pooled, kparams))
    ref = jax.block_until_ready(forward_reference(pooled, params))

    assert out.shape == (B, EMBED), out.shape
    # bf16 matmul operands (f32 accumulation) -> loose tolerance vs. pure-f32 math.
    assert jnp.allclose(out, ref, atol=1e-2, rtol=1e-2), float(jnp.abs(out - ref).max())
    print("KERNEL_OK")
</pallas_src>

<mosaic_0001>
module attributes {stable_mosaic.version = 11 : i64} {
  func.func @_cnn_head_kernel(%arg0: i32, %arg1: i32, %arg2: i32, %arg3: memref<8x512xf32, #tpu.memory_space<vmem>>, %arg4: memref<512x128xbf16, #tpu.memory_space<vmem>>, %arg5: memref<1x128xf32, #tpu.memory_space<vmem>>, %arg6: memref<1x128xf32, #tpu.memory_space<vmem>>, %arg7: memref<1x128xf32, #tpu.memory_space<vmem>>, %arg8: memref<8x128xf32, #tpu.memory_space<vmem>>, %arg9: memref<8x128xf32, #tpu.memory_space<vmem>>) attributes {dimension_semantics = [#tpu.dimension_semantics<parallel>, #tpu.dimension_semantics<parallel>, #tpu.dimension_semantics<arbitrary>], iteration_bounds = array<i64: 1, 1, 4>, scalar_prefetch = 0 : i64, scratch_operands = 1 : i64, tpu.core_type = #tpu.core_type<tc>, window_params = [{transform_indices = @transform_0, window_bounds = array<i64: 8, 512>}, {transform_indices = @transform_1, window_bounds = array<i64: 512, 128>}, {transform_indices = @transform_2, window_bounds = array<i64: 1, 128>}, {transform_indices = @transform_3, window_bounds = array<i64: 1, 128>}, {transform_indices = @transform_4, window_bounds = array<i64: 1, 128>}, {transform_indices = @transform_5, window_bounds = array<i64: 8, 128>}]} {
    %c0_i32 = arith.constant 0 : i32
    %0 = arith.cmpi eq, %arg2, %c0_i32 : i32
    %1 = arith.extui %0 : i1 to i32
    %c0_i32_0 = arith.constant 0 : i32
    %2 = arith.cmpi ne, %1, %c0_i32_0 : i32
    scf.if %2 {
      %cst_9 = arith.constant 0.000000e+00 : f32
      %13 = vector.broadcast %cst_9 : f32 to vector<8x128xf32>
      %c0_10 = arith.constant 0 : index
      %c0_11 = arith.constant 0 : index
      %14 = vector.load %arg9[%c0_10, %c0_11] : memref<8x128xf32, #tpu.memory_space<vmem>>, vector<8x128xf32>
      tpu.vector_store %arg9[%c0_10, %c0_11], %13 {strides = array<i32>} : memref<8x128xf32, #tpu.memory_space<vmem>>, vector<8x128xf32>,
    } else {
    }
    %c0 = arith.constant 0 : index
    %c0_1 = arith.constant 0 : index
    %3 = vector.load %arg9[%c0, %c0_1] : memref<8x128xf32, #tpu.memory_space<vmem>>, vector<8x128xf32>
    %c0_2 = arith.constant 0 : index
    %c0_3 = arith.constant 0 : index
    %4 = vector.load %arg3[%c0_2, %c0_3] : memref<8x512xf32, #tpu.memory_space<vmem>>, vector<8x512xf32>
    %5 = arith.truncf %4 : vector<8x512xf32> to vector<8x512xbf16>
    %c0_4 = arith.constant 0 : index
    %c0_5 = arith.constant 0 : index
    %6 = vector.load %arg4[%c0_4, %c0_5] : memref<512x128xbf16, #tpu.memory_space<vmem>>, vector<512x128xbf16>
    %cst = arith.constant dense<0.000000e+00> : vector<8x128xf32>
    %7 = tpu.matmul %5, %6, %cst {dimension_numbers = #tpu.dot_dimension_numbers<[1], [0], [0], [1], [0, 0, 1, 1], [], []>} : vector<8x512xbf16>, vector<512x128xbf16>, vector<8x128xf32> -> vector<8x128xf32>
    %8 = arith.addf %3, %7 : vector<8x128xf32>
    %c0_6 = arith.constant 0 : index
    %c0_7 = arith.constant 0 : index
    %9 = vector.load %arg9[%c0_6, %c0_7] : memref<8x128xf32, #tpu.memory_space<vmem>>, vector<8x128xf32>
    tpu.vector_store %arg9[%c0_6, %c0_7], %8 {strides = array<i32>} : memref<8x128xf32, #tpu.memory_space<vmem>>, vector<8x128xf32>,
    %c3_i32 = arith.constant 3 : i32
    %10 = arith.cmpi eq, %arg2, %c3_i32 : i32
    %11 = arith.extui %10 : i1 to i32
    %c0_i32_8 = arith.constant 0 : i32
    %12 = arith.cmpi ne, %11, %c0_i32_8 : i32
    scf.if %12 {
      %c0_9 = arith.constant 0 : index
      %c0_10 = arith.constant 0 : index
      %13 = vector.load %arg9[%c0_9, %c0_10] : memref<8x128xf32, #tpu.memory_space<vmem>>, vector<8x128xf32>
      %c0_11 = arith.constant 0 : index
      %c0_12 = arith.constant 0 : index
      %14 = vector.load %arg5[%c0_11, %c0_12] : memref<1x128xf32, #tpu.memory_space<vmem>>, vector<1x128xf32>
      %15 = vector.broadcast %14 : vector<1x128xf32> to vector<8x128xf32>
      %16 = arith.addf %13, %15 : vector<8x128xf32>
      %c0_13 = arith.constant 0 : index
      %c0_14 = arith.constant 0 : index
      %17 = vector.load %arg6[%c0_13, %c0_14] : memref<1x128xf32, #tpu.memory_space<vmem>>, vector<1x128xf32>
      %18 = vector.broadcast %17 : vector<1x128xf32> to vector<8x128xf32>
      %19 = arith.mulf %16, %18 : vector<8x128xf32>
      %c0_15 = arith.constant 0 : index
      %c0_16 = arith.constant 0 : index
      %20 = vector.load %arg7[%c0_15, %c0_16] : memref<1x128xf32, #tpu.memory_space<vmem>>, vector<1x128xf32>
      %21 = vector.broadcast %20 : vector<1x128xf32> to vector<8x128xf32>
      %22 = arith.addf %19, %21 : vector<8x128xf32>
      %c0_17 = arith.constant 0 : index
      %c0_18 = arith.constant 0 : index
      %23 = vector.load %arg8[%c0_17, %c0_18] : memref<8x128xf32, #tpu.memory_space<vmem>>, vector<8x128xf32>
      tpu.vector_store %arg8[%c0_17, %c0_18], %22 {strides = array<i32>} : memref<8x128xf32, #tpu.memory_space<vmem>>, vector<8x128xf32>,
    } else {
    }
    return
  }
  func.func @transform_0(%arg0: i32, %arg1: i32, %arg2: i32) -> (i32, i32) {
    %c0_i32 = arith.constant 0 : i32
    return %arg0, %arg2 : i32, i32
  }
  func.func @transform_1(%arg0: i32, %arg1: i32, %arg2: i32) -> (i32, i32) {
    %c0_i32 = arith.constant 0 : i32
    return %arg2, %arg1 : i32, i32
  }
  func.func @transform_2(%arg0: i32, %arg1: i32, %arg2: i32) -> (i32, i32) {
    %c0_i32 = arith.constant 0 : i32
    %c0_i32_0 = arith.constant 0 : i32
    return %c0_i32, %arg1 : i32, i32
  }
  func.func @transform_3(%arg0: i32, %arg1: i32, %arg2: i32) -> (i32, i32) {
    %c0_i32 = arith.constant 0 : i32
    %c0_i32_0 = arith.constant 0 : i32
    return %c0_i32, %arg1 : i32, i32
  }
  func.func @transform_4(%arg0: i32, %arg1: i32, %arg2: i32) -> (i32, i32) {
    %c0_i32 = arith.constant 0 : i32
    %c0_i32_0 = arith.constant 0 : i32
    return %c0_i32, %arg1 : i32, i32
  }
  func.func @transform_5(%arg0: i32, %arg1: i32, %arg2: i32) -> (i32, i32) {
    %c0_i32 = arith.constant 0 : i32
    return %arg0, %arg1 : i32, i32
  }
}

</mosaic_0001>

<bundles_post_ra>
// kernel: tpu_custom_call.1
= control target key start
LH: loop header
LB: loop body
LE: loop exit
PB: predicated region body
PF: predicated region fallthrough
CT: control target
= control target key end

     0   :  { %10 = vsyncpa [#allocation4], 0  ;;  %s1437_s0 = inlined_call_operand.hbm [shape: f32[8,2048], index: 0, kind: input, shape index: {}]   ;;  %s1438_s1 = inlined_call_operand.hbm [shape: bf16[2048,128], index: 1, kind: input, shape index: {}]   ;;  %s1439_s2 = inlined_call_operand.vmem [shape: f32[1,128], index: 2, kind: input, shape index: {}]   ;;  %s1440_s3 = inlined_call_operand.vmem [shape: f32[1,128], index: 3, kind: input, shape index: {}]   ;;  %s1441_s4 = inlined_call_operand.vmem [shape: f32[1,128], index: 4, kind: input, shape index: {}]   ;;  %s1442_s5 = inlined_call_operand.hbm [shape: f32[8,128], index: 5, kind: output, shape index: {}]  }
   0x1   :  { %12 = vsyncpa [#allocation4 + $0x1], 0 }
   0x2   :  { %13 = vsyncpa [#allocation7], 0 }
   0x3   :  { %15 = vsyncpa [#allocation7 + $0x1], 0 }
   0x4   :  { %16 = vsyncpa [#allocation5], 0  ;;  %s1274_s18 = smov 0   ;;  %s1276_s19 = smov 0  }
   0x5   :  { %s1278_s20 = smov 0   ;;  %s1280_s21 = smov 0  }
   0x6   :  { %s1282_s22 = smov 0   ;;  %s1284_s23 = smov 0  }
   0x7 LB: > { %s836_s24 = sadd.s32 4294967295, %s1238_s23   ;;  %s34_s25 = sadd.s32 1, %s1234_s22  ;;  %s1238_s23 = sphi %s1284_s23, %s22_s23   ;;  %s1234_s22 = sphi %s1282_s22, %s1450_s22   ;;  %s1230_s21 = sphi %s1280_s21, %s1449_s21   ;;  %s1226_s20 = sphi %s1278_s20, %s1448_s20   ;;  %s1222_s19 = sphi %s1276_s19, %s1447_s19   ;;  %s1218_s18 = sphi %s1274_s18, %s1446_s18  }
   0x8   : > { %p35_p0 = scmp.ge.s32.totalorder %s34_s25, 4  ;;  %s50_s26 = sadd.s32 1, %s1226_s20 }
   0x9   : > { %p57_p1 = scmp.ne.s32.totalorder %s1226_s20, %s1222_s19  ;;  %p58_p2 = scmp.eq.s32.totalorder %s1238_s23, 0 }
   0xa   : > { %s1452_s25 = smov (%p35_p0, %s34_s25), 0  ;;  %p63_p4 = scmp.ne.s32.totalorder %s1222_s19, %s1218_s18 }
   0xb   : > { %p1310_p3 = por %p58_p2, %p57_p1  ;;  %s46_s28 = ssub.s32 %s1234_s22, %s1452_s25 }
   0xc   : > { %p64_p5 = scmp.eq.s32.totalorder %s836_s24, 0  ;;  %p48_p6 = scmp.eq.s32.totalorder %s46_s28, 0 }
   0xd   : > { %p1034_p8 = scmp.lt.s32.totalorder %s1238_s23, 4  ;;  %s1328_s6 = sand.u32 1, %s1226_s20  }
   0xe   : > { %p1319_p7 = por %p64_p5, %p63_p4  ;;  %s985_s7 = sshll.u32 %s1234_s22, 5 }
   0xf   : > { %s1325_s30 = scalar_select %p48_p6, %s1226_s20, %s50_s26  }
  0x10   : > { %s842_s8 = sshll.u32 %s1328_s6, 5  ;;  %s250_s11 = scalar_lea.hbm %s1437_s0, %s985_s7 }
  0x11   : > { %s252_s12 = sshll.u32 %s250_s11, 4  ;;  %s243_s13 = scalar_lea.vmem [#allocation3], %s842_s8  ;;  %s253_s12 = int_to_ptr.hbm [resolvable:$true] %s252_s12 }
  0x12   : > { %s254_s14 = sshll.u32 %s243_s13, 4  ;;  %p1337_p9 = pnand %p1034_p8, %p1310_p3  ;;  %s255_s14 = int_to_ptr.vmem [resolvable:$true] %s254_s14 }
  0x13   : > { %p848_p10 = scmp.ge.s32.totalorder %s1238_s23, 1  ;;  %p282_p11 = scmp.lt.s32.totalorder %s1238_s23, 5 }
  0x14   : > { %s845_s16 = sshll.u32 %s1328_s6, 8  ;;  %s240_s17 = scalar_lea.sflag [#allocation4], %s1328_s6 }
  0x15   : > { %1030 = dma.hbm_to_vmem [thread:$0]  (!%p1337_p9), %s253_s12, 512, %s255_s14, %s240_s17  }
  0x16   : > { %p283_p12 = pnand %p848_p10, %p282_p11  ;;  %s986_s18 = sshll.u32 %s1234_s22, 8 }
  0x17   : > { %s265_s26 = scalar_lea.vmem [#allocation6], %s845_s16  ;;  %s271_s27 = scalar_lea.hbm %s1438_s1, %s986_s18 }
  0x18   : > { %s274_s28 = sshll.u32 %s265_s26, 4  ;;  %s272_s9 = sshll.u32 %s271_s27, 4  ;;  %s275_s28 = int_to_ptr.vmem [resolvable:$true] %s274_s28  ;;  %s273_s9 = int_to_ptr.hbm [resolvable:$true] %s272_s9 }
  0x19   : > { %s262_s10 = scalar_lea.sflag [#allocation7], %s1328_s6  ;;  %s1240_s11 = smov 64  }
  0x1a   : > { %s1241_s13 = smov 4   ;;  %286 = sbr.rel (%p283_p12) target bundleno = 237 (0xed), region = 40 }
  0x1b   : > { %1033 = dma.hbm_to_vmem [thread:$0]  (!%p1337_p9), %s273_s9, 4096, %s275_s28, %s262_s10, %s1240_s11, %s1240_s11, %s1241_s13  }
  0x1c   : > { %s288_s12 = sand.u32 (!%p283_p12), 1, %s1222_s19  }
  0x1d   : > { %s849_s14 = sshll.u32 (!%p283_p12), %s288_s12, 5  ;;  %s289_s17 = scalar_lea.sflag (!%p283_p12), [#allocation4], %s288_s12 }
  0x1e   : > { %s1355_s16 = scalar_lea.vmem (!%p283_p12), [#allocation3], %s849_s14 }
  0x1f   : > { %1205 = dma.done.wait (%p1319_p7), %s289_s17, 512  }
  0x20   : > { %1207 = vsyncadd (%p1319_p7), %s289_s17, 4294966784  ;;  %s850_s18 = sshll.u32 %s288_s12, 8  ;;  %s299_s6 = scalar_lea.sflag [#allocation7], %s288_s12 }
  0x21   : > { %s1361_s26 = scalar_lea.vmem [#allocation6], %s850_s18 }
  0x22   : > { %1209 = dma.done.wait (%p1319_p7), %s299_s6, 4096  }
  0x23   : > { %1211 = vsyncadd (%p1319_p7), %s299_s6, 4294963200  ;;  %p851_p13 = scmp.ne.s32.totalorder %s1230_s21, 0 }
  0x25   : > { %353 = sbr.rel (%p851_p13) target bundleno = 44 (0x2c), region = 52 }
  0x2a   : > { %v1242_v0 = vmov 0.0  }
  0x2b   : > { %354 = vst [vmem:[#allocation2] sm:$0xff] %v1242_v0 }
  0x2c PF: > { %v994_v1 = vld [vmem:[%s1361_s26 + $0x38] sm:$0xff]  ;;  %v993_v5 = vld [vmem:[%s1361_s26 + $0x30] sm:$0xff]  ;;  %v992_v9 = vld [vmem:[%s1361_s26 + $0x28] sm:$0xff]  ;;  %p980_p0 = scmp.ne.s32.totalorder %s1230_s21, 3 }
  0x2d   : > { %v1002_v2 = vld [vmem:[%s1361_s26 + $0x78] sm:$0xff]  ;;  %620 = vmatpush.bf16.msra.mxu0 %v994_v1  ;;  %v1001_v6 = vld [vmem:[%s1361_s26 + $0x70] sm:$0xff]  ;;  %v1000_v10 = vld [vmem:[%s1361_s26 + $0x68] sm:$0xff] }
  0x2e   : > { %v1010_v3 = vld [vmem:[%s1361_s26 + $0xb8] sm:$0xff]  ;;  %633 = vmatpush.bf16.msra.mxu1 %v1002_v2  ;;  %v1009_v7 = vld [vmem:[%s1361_s26 + $0xb0] sm:$0xff]  ;;  %v1008_v11 = vld [vmem:[%s1361_s26 + $0xa8] sm:$0xff] }
  0x2f   : > { %v1018_v4 = vld [vmem:[%s1361_s26 + $0xf8] sm:$0xff]  ;;  %646 = vmatpush.bf16.msra.mxu2 %v1010_v3  ;;  %v1017_v8 = vld [vmem:[%s1361_s26 + $0xf0] sm:$0xff]  ;;  %v1016_v12 = vld [vmem:[%s1361_s26 + $0xe8] sm:$0xff] }
  0x30   : > { %659 = vmatpush.bf16.msra.mxu3 %v1018_v4  ;;  %v991_v13 = vld [vmem:[%s1361_s26 + $0x20] sm:$0xff]  ;;  %v990_v17 = vld [vmem:[%s1361_s26 + $0x18] sm:$0xff]  ;;  %v989_v21 = vld [vmem:[%s1361_s26 + $0x10] sm:$0xff] }
  0x31   : > { %621 = vmatpush.bf16.msra.mxu0 %v993_v5  ;;  %v999_v14 = vld [vmem:[%s1361_s26 + $0x60] sm:$0xff]  ;;  %v998_v18 = vld [vmem:[%s1361_s26 + $0x58] sm:$0xff]  ;;  %v997_v22 = vld [vmem:[%s1361_s26 + $0x50] sm:$0xff] }
  0x32   : > { %634 = vmatpush.bf16.msra.mxu1 %v1001_v6  ;;  %v1007_v15 = vld [vmem:[%s1361_s26 + $0xa0] sm:$0xff]  ;;  %v1006_v19 = vld [vmem:[%s1361_s26 + $0x98] sm:$0xff]  ;;  %v1005_v23 = vld [vmem:[%s1361_s26 + $0x90] sm:$0xff] }
  0x33   : > { %647 = vmatpush.bf16.msra.mxu2 %v1009_v7  ;;  %v1015_v16 = vld [vmem:[%s1361_s26 + $0xe0] sm:$0xff]  ;;  %v1014_v20 = vld [vmem:[%s1361_s26 + $0xd8] sm:$0xff]  ;;  %v1013_v24 = vld [vmem:[%s1361_s26 + $0xd0] sm:$0xff] }
  0x34   : > { %660 = vmatpush.bf16.msra.mxu3 %v1017_v8  ;;  %v988_v25 = vld [vmem:[%s1361_s26 + $0x8] sm:$0xff]  ;;  %v987_v29 = vld [vmem:[%s1361_s26] sm:$0xff]  ;;  %v358_v35 = vld [vmem:[%s1355_s16 + $0x10] sm:$0xff] }
  0x35   : > { %622 = vmatpush.bf16.msra.mxu0 %v992_v9  ;;  %v996_v26 = vld [vmem:[%s1361_s26 + $0x48] sm:$0xff]  ;;  %v995_v30 = vld [vmem:[%s1361_s26 + $0x40] sm:$0xff]  ;;  %v359_v36 = vld [vmem:[%s1355_s16 + $0x18] sm:$0xff]  ;;  %v362_v39 = vpack.c.bf16 %v358_v35, %v358_v35 }
  0x36   : > { %635 = vmatpush.bf16.msra.mxu1 %v1000_v10  ;;  %v1004_v27 = vld [vmem:[%s1361_s26 + $0x88] sm:$0xff]  ;;  %v1003_v31 = vld [vmem:[%s1361_s26 + $0x80] sm:$0xff]  ;;  %v363_v40 = vpack.c.bf16 %v359_v36, %v359_v36  ;;  %v355_v49 = vld [vmem:[#allocation2] sm:$0xff] }
  0x37   : > { %648 = vmatpush.bf16.msra.mxu2 %v1008_v11  ;;  %v1012_v28 = vld [vmem:[%s1361_s26 + $0xc8] sm:$0xff]  ;;  %v356_v32 = vld [vmem:[%s1355_s16] sm:$0xff] }
  0x38   : > { %661 = vmatpush.bf16.msra.mxu3 %v1016_v12  ;;  %v357_v33 = vld [vmem:[%s1355_s16 + $0x8] sm:$0xff]  ;;  %v1011_v34 = vld [vmem:[%s1361_s26 + $0xc0] sm:$0xff]  ;;  %v360_v37 = vpack.c.bf16 %v356_v32, %v356_v32 }
  0x39   : > { %623 = vmatpush.bf16.msra.mxu0 %v991_v13  ;;  %v361_v38 = vpack.c.bf16 %v357_v33, %v357_v33 }
  0x3a   : > { %636 = vmatpush.bf16.msra.mxu1 %v999_v14 }
  0x3b   : > { %649 = vmatpush.bf16.msra.mxu2 %v1007_v15 }
  0x3c   : > { %662 = vmatpush.bf16.msra.mxu3 %v1015_v16 }
  0x3d   : > { %624 = vmatpush.bf16.msra.mxu0 %v990_v17 }
  0x3e   : > { %637 = vmatpush.bf16.msra.mxu1 %v998_v18 }
  0x3f   : > { %650 = vmatpush.bf16.msra.mxu2 %v1006_v19 }
  0x40   : > { %663 = vmatpush.bf16.msra.mxu3 %v1014_v20 }
  0x41   : > { %625 = vmatpush.bf16.msra.mxu0 %v989_v21 }
  0x42   : > { %638 = vmatpush.bf16.msra.mxu1 %v997_v22 }
  0x43   : > { %651 = vmatpush.bf16.msra.mxu2 %v1005_v23 }
  0x44   : > { %664 = vmatpush.bf16.msra.mxu3 %v1013_v24 }
  0x45   : > { %626 = vmatpush.bf16.msra.mxu0 %v988_v25 }
  0x46   : > { %639 = vmatpush.bf16.msra.mxu1 %v996_v26 }
  0x47   : > { %652 = vmatpush.bf16.msra.mxu2 %v1004_v27 }
  0x48   : > { %665 = vmatpush.bf16.msra.mxu3 %v1012_v28 }
  0x49   : > { %627 = vmatpush.bf16.msra.mxu0 %v987_v29 }
  0x4a   : > { %640 = vmatpush.bf16.msra.mxu1 %v995_v30 }
  0x4b   : > { %653 = vmatpush.bf16.msra.mxu2 %v1003_v31 }
  0x4c   : > { %666 = vmatpush.bf16.msra.mxu3 %v1011_v34  ;;  %628 = vmatmul.bf16.vlgmr.msra.gmra.mxu0 %v360_v37 }
  0x4d   : > { %641 = vmatmul.bf16.vlgmr.msra.gmra.mxu1 %v361_v38 }
  0x4e   : > { %654 = vmatmul.bf16.vlgmr.msra.gmra.mxu2 %v362_v39 }
  0x4f   : > { %667 = vmatmul.bf16.vlgmr.msra.gmra.mxu3 %v363_v40 }
  0xc9   : > { %v629_v41 = vpop.f32.mrf.mxu0 }
  0xca   : > { %v642_v42 = vpop.f32.mrf.mxu1 }
  0xcb   : > { %v643_v43 = vadd.f32 %v642_v42, %v629_v41 }
  0xd1   : > { %v655_v44 = vpop.f32.mrf.mxu2  ;;  %v631_v47 = vpop.f32.mrf.mxu0 }
  0xd2   : > { %v668_v45 = vpop.f32.mrf.mxu3  ;;  %v656_v46 = vadd.f32 %v655_v44, %v643_v43  ;;  %v644_v48 = vpop.f32.mrf.mxu1 }
  0xd4   : > { %v669_v50 = vadd.f32 %v668_v45, %v656_v46 }
  0xd6   : > { %v672_v51 = vadd.f32 %v669_v50, %v355_v49  ;;  %677 = sbr.rel (%p980_p0) target bundleno = 231 (0xe7), region = 56 }
  0xd8   : > { %673 = vst [vmem:[#allocation2] sm:$0xff] %v672_v51 }
  0xd9   : > { %v657_v52 = vpop.f32.mrf.mxu2 }
  0xda   : > { %v670_v53 = vpop.f32.mrf.mxu3 }
  0xdb   : > { %v1089_v55 = vld [vmem:[%s1439_s2] ss:$0 sm:$0xff] }
  0xdc   : > { %v1090_v56 = vld [vmem:[%s1440_s3] ss:$0 sm:$0xff] }
  0xdd   : > { %v1091_v58 = vld [vmem:[%s1441_s4] ss:$0 sm:$0xff] }
  0xdf   : > { %v678_v54 = vld [vmem:[#allocation2] sm:$0xff] }
  0xe0   : > { %v683_v57 = vadd.f32 %v1089_v55, %v678_v54 }
  0xe2   : > { %v688_v59 = vmul.f32 %v1090_v56, %v683_v57 }
  0xe4   : > { %v693_v60 = vadd.f32 %v1091_v58, %v688_v59 }
  0xe6   : > { %694 = vst [vmem:[#allocation8] sm:$0xff] %v693_v60 }
  0xe7 PF: > { %p1035_p1 = scmp.eq.s32.totalorder %s836_s24, 3  ;;  %s706_s10 = sshll.u32 %s1442_s5, 4  ;;  %s707_s10 = int_to_ptr.hbm [resolvable:$true] %s706_s10 }
  0xe8   : > { %s1243_s11 = smov [#allocation8]  }
  0xe9   : > { %s704_s13 = sshll.u32 %s1243_s11, 4  ;;  %s705_s13 = int_to_ptr.vmem [resolvable:$true] %s704_s13 }
  0xea   : > { %1024 = dma.vmem_to_hbm [thread:$0]  (%p1035_p1), %s705_s13, 128, %s707_s10, [#allocation5]  }
  0xeb   : > { %1213 = dma.done.wait (%p1035_p1), [#allocation5], 128  }
  0xec   : > { %1215 = vsyncadd (%p1035_p1), [#allocation5], 4294967168 }
  0xed PF: > { %s22_s23 = sadd.s32 1, %s1238_s23   ;;  %s1446_s18 = smov %s1222_s19 }
  0xee   : > { %p19_p2 = scmp.ge.s32.totalorder %s22_s23, 6   ;;  %s1447_s19 = smov %s1226_s20 }
  0xef   : > { %s1448_s20 = smov %s1325_s30  ;;  %s1449_s21 = smov %s1234_s22 }
  0xf0   : > { %s1450_s22 = smov %s1452_s25  ;;  %21 = sbr.rel (!%p19_p2) target bundleno = 7 (0x7), region = 108 }
  0xf5   :  { %720 = vsyncpa [#allocation4], 1 }
  0xf6   :  { %722 = vsyncpa [#allocation4 + $0x1], 1 }
  0xf7   :  { %723 = vsyncpa [#allocation7], 1 }
  0xf8   :  { %725 = vsyncpa [#allocation7 + $0x1], 1 }
  0xf9   :  { %726 = vsyncpa [#allocation5], 1 }
  0xfa   :  { %728 = vsyncpa [#allocation5 + $0x1], 1 }

</bundles_post_ra>
